<compile_context>
chip_gen: v7x
topology: tpu7x:2x2x1
jax: 0.10.0
libtpu: 0.0.40
codegen_flags: <defaults>
</compile_context>

<pallas_src>
import functools

import numpy as np
import jax
import jax.numpy as jnp
from jax import lax
from jax.experimental import pallas as pl
from jax.experimental.pallas import tpu as pltpu


# ----------------------------- config (deterministic, TEST mode) --------------
STRIDE = 16
ANCHOR_BASES = np.array(
    [[-8.0, -8.0, 8.0, 8.0],
     [-16.0, -8.0, 16.0, 8.0],
     [-8.0, -16.0, 8.0, 16.0]], dtype=np.float32)          # (A=3, 4)
PRE_NMS_TOP_N = {"TRAIN": 128, "TEST": 64}
POST_NMS_TOP_N = {"TRAIN": 32, "TEST": 16}
NMS_THRESH = {"TRAIN": 0.7, "TEST": 0.7}
MIN_SIZE = {"TRAIN": 16, "TEST": 16}   # extracted but unused in forward (matches PyTorch)


# ----------------------------- anchor shifting (host-side, static) ------------
def shift_anchor_bases(anchor_bases, stride, feat_hw):
    """Replicates py-faster-rcnn shift ordering: (h, w, a)."""
    H, W = feat_hw
    shift_x = np.arange(W) * stride
    shift_y = np.arange(H) * stride
    sx, sy = np.meshgrid(shift_x, shift_y)                  # (H, W)
    shifts = np.stack([sx.ravel(), sy.ravel(), sx.ravel(), sy.ravel()],
                      axis=1).astype(np.float32)            # (H*W, 4)
    anchors = (anchor_bases[None, :, :] + shifts[:, None, :]).reshape(-1, 4)
    return anchors                                          # (H*W*A, 4)


# ----------------------------- kernel 1: decode + clip ------------------------
def decode_clip_kernel(geom_ref, deltas_ref, bounds_ref, out_ref):
    # geom_ref:   (1, 4, K)  rows = [widths, heights, ctr_x, ctr_y] (constants)
    # deltas_ref: (B, 4, K)  rows = [dx, dy, dw, dh]
    # bounds_ref: (B, 2, 1)  rows = [W_img-1, H_img-1]
    # out_ref:    (B, 4, K)  rows = [x1, y1, x2, y2] clipped
    widths = geom_ref[:, 0:1, :]
    heights = geom_ref[:, 1:2, :]
    ctr_x = geom_ref[:, 2:3, :]
    ctr_y = geom_ref[:, 3:4, :]

    dx = deltas_ref[:, 0:1, :]
    dy = deltas_ref[:, 1:2, :]
    exp_wh = jnp.exp(deltas_ref[:, 2:4, :])                 # single fused EUP pass

    pred_ctr_x = dx * widths + ctr_x
    pred_ctr_y = dy * heights + ctr_y
    half_w = 0.5 * (exp_wh[:, 0:1, :] * widths)
    half_h = 0.5 * (exp_wh[:, 1:2, :] * heights)

    bx = bounds_ref[:, 0:1, :]                              # (B, 1, 1)
    by = bounds_ref[:, 1:2, :]

    # per-row stores: no sublane concatenate / relayout
    out_ref[:, 0:1, :] = jnp.clip(pred_ctr_x - half_w, 0.0, bx)
    out_ref[:, 1:2, :] = jnp.clip(pred_ctr_y - half_h, 0.0, by)
    out_ref[:, 2:3, :] = jnp.clip(pred_ctr_x + half_w, 0.0, bx)
    out_ref[:, 3:4, :] = jnp.clip(pred_ctr_y + half_h, 0.0, by)


def decode_clip(geom_14k, deltas_b4k, bounds_b21):
    B, _, K = deltas_b4k.shape
    # Whole problem fits trivially in VMEM -> single invocation, no grid.
    return pl.pallas_call(
        decode_clip_kernel,
        out_shape=jax.ShapeDtypeStruct((B, 4, K), jnp.float32),
        in_specs=[pl.BlockSpec(memory_space=pltpu.MemorySpace.VMEM)] * 3,
        out_specs=pl.BlockSpec(memory_space=pltpu.MemorySpace.VMEM),
    )(geom_14k, deltas_b4k, bounds_b21)


# ----------------------------- kernel 2: greedy NMS ---------------------------
def nms_kernel(boxes_ref, keep_ref, mask_ref, *, thresh, n_valid):
    # boxes_ref: (B, 4, N) coord-major, score-descending along N (lane-padded).
    # keep_ref:  (B, N)    1.0 = kept, 0.0 = suppressed.
    # mask_ref:  (B, N, N) scratch; mask[b, i, j] = 1.0 iff box i suppresses box j (j > i).
    B, _, N = boxes_ref.shape

    lane_j = lax.broadcasted_iota(jnp.int32, (N, N), 1)
    sub_i = lax.broadcasted_iota(jnp.int32, (N, N), 0)
    tri = lane_j > sub_i                                    # upper triangle (j > i)

    # ---- parallel phase: build the thresholded suppression mask (no divides) ---
    for b in range(B):
        rows = boxes_ref[b]                                 # (4, N)
        x1 = rows[0:1, :]
        y1 = rows[1:2, :]
        x2 = rows[2:3, :]
        y2 = rows[3:4, :]
        areas = (x2 - x1 + 1.0) * (y2 - y1 + 1.0)           # (1, N)

        # Column view via one small native (8,N)->(N,8) transpose (XLU slot).
        packed = jnp.concatenate(
            [rows, areas, jnp.zeros((3, N), jnp.float32)], axis=0)   # (8, N)
        cols = packed.T                                     # (N, 8)
        x1c = cols[:, 0:1]
        y1c = cols[:, 1:2]
        x2c = cols[:, 2:3]
        y2c = cols[:, 3:4]
        areas_c = cols[:, 4:5]                              # (N, 1)

        xx1 = jnp.maximum(x1c, x1)
        yy1 = jnp.maximum(y1c, y1)
        xx2 = jnp.minimum(x2c, x2)
        yy2 = jnp.minimum(y2c, y2)
        w = jnp.maximum(xx2 - xx1 + 1.0, 0.0)
        h = jnp.maximum(yy2 - yy1 + 1.0, 0.0)
        inter = w * h                                       # (N, N)
        # IoU > thresh  <=>  inter > thresh * union   (union > 0 for real boxes)
        sup = inter > thresh * (areas_c + areas - inter)
        mask_ref[b] = jnp.where(jnp.logical_and(sup, tri), 1.0, 0.0)

    # ---- serial phase: forward greedy suppression, fully unrolled --------------
    # keep[j] *= (1 - keep[i] * mask[i, j]); exact 0/1 float arithmetic.
    # Mask rows are streamed in sublane-aligned (8, N) blocks to cut vld count;
    # the per-step slices below are static (register) slices of the loaded block.
    keep = jnp.ones((B, 1, N), jnp.float32)
    n_steps = max(int(n_valid) - 1, 0)                      # static
    for i0 in range(0, n_steps, 8):
        blk = mask_ref[:, i0:i0 + 8, :]                     # (B, 8, N) aligned load
        for di in range(min(8, n_steps - i0)):
            i = i0 + di
            ki = keep[:, :, i:i + 1]                        # (B, 1, 1) static lane slice
            row = blk[:, di:di + 1, :]                      # (B, 1, N) static sublane slice
            keep = keep * (1.0 - ki * row)
    keep_ref[...] = keep[:, 0, :]


def nms_keep_mask(boxes_b4n, thresh, n_valid):
    B, _, N = boxes_b4n.shape
    kernel = functools.partial(nms_kernel, thresh=float(thresh), n_valid=int(n_valid))
    keep = pl.pallas_call(
        kernel,
        out_shape=jax.ShapeDtypeStruct((B, N), jnp.float32),
        in_specs=[pl.BlockSpec(memory_space=pltpu.MemorySpace.VMEM)],
        out_specs=pl.BlockSpec(memory_space=pltpu.MemorySpace.VMEM),
        scratch_shapes=[pltpu.VMEM((B, N, N), jnp.float32)],
    )(boxes_b4n)
    return keep                                             # (B, N)


# ----------------------------- full forward -----------------------------------
def rpn_proposal_forward(scores, bbox_deltas, im_info, anchor_bases, stride,
                         pre_nms_top_n, post_nms_top_n, nms_thresh, min_size,
                         training=False):
    cfg_key = "TRAIN" if training else "TEST"
    pre_n = pre_nms_top_n[cfg_key]
    post_n = post_nms_top_n[cfg_key]
    thresh = nms_thresh[cfg_key]
    del min_size  # extracted but unused in the reference forward

    A = anchor_bases.shape[0]
    B = bbox_deltas.shape[0]
    H, W = scores.shape[2], scores.shape[3]
    K = H * W * A

    # fg scores -> (B, K), K ordered as (h, w, a)
    fg_scores = jnp.transpose(scores[:, A:, :, :], (0, 2, 3, 1)).reshape(B, K)
    # deltas -> coord-major (B, 4, K) in a single relayout (channel = a*4 + c)
    deltas_b4k = jnp.transpose(
        bbox_deltas.reshape(B, A, 4, H, W), (0, 2, 3, 4, 1)
    ).reshape(B, 4, K).astype(jnp.float32)

    anchors_np = shift_anchor_bases(np.asarray(anchor_bases), stride, (H, W))  # (K, 4)
    anchors = jnp.asarray(anchors_np, jnp.float32)
    # anchor geometry as compile-time constants: [widths, heights, ctr_x, ctr_y]
    aw = anchors_np[:, 2] - anchors_np[:, 0] + 1.0
    ah = anchors_np[:, 3] - anchors_np[:, 1] + 1.0
    acx = anchors_np[:, 0] + 0.5 * aw
    acy = anchors_np[:, 1] + 0.5 * ah
    geom = jnp.asarray(np.stack([aw, ah, acx, acy], axis=0)[None], jnp.float32)  # (1,4,K)

    im_info = im_info.astype(jnp.float32)
    # clip bounds per batch: [W_img-1, H_img-1]
    bounds = jnp.stack([im_info[:, 1] - 1.0, im_info[:, 0] - 1.0],
                       axis=1)[..., None]                   # (B, 2, 1)

    proposals_b4k = decode_clip(geom, deltas_b4k, bounds)   # (B, 4, K)

    # sort by score (descending), keep pre_nms top-N (gather stays coord-major)
    n_pre = min(pre_n, K) if 0 < pre_n < B * K else K
    top_scores, order = lax.top_k(fg_scores, n_pre)         # (B, n_pre)
    props_b4n = jnp.take_along_axis(proposals_b4k, order[:, None, :], axis=2)  # (B,4,n_pre)

    # lane-pad the NMS problem to a multiple of 128 with zero-area dummy boxes
    # ([0,0,-1,-1] has zero area and zero intersection with any clipped box, so
    #  it never suppresses and is never selected).
    N_pad = max(128, ((n_pre + 127) // 128) * 128)
    if N_pad > n_pre:
        dummy = jnp.broadcast_to(
            jnp.array([0.0, 0.0, -1.0, -1.0], jnp.float32)[None, :, None],
            (B, 4, N_pad - n_pre))
        boxes_pad = jnp.concatenate([props_b4n, dummy], axis=2)
    else:
        boxes_pad = props_b4n

    keep = nms_keep_mask(boxes_pad, thresh, n_pre)[:, :n_pre]   # (B, n_pre) in {0,1}

    # stable selection of kept boxes (score order preserved), take post_nms top-N
    pos = jnp.arange(n_pre)
    sort_key = jnp.where(keep > 0.5, pos[None, :], pos[None, :] + n_pre)
    sel = jnp.argsort(sort_key, axis=1)[:, :post_n]         # (B, post_n)
    num_kept = jnp.sum(keep > 0.5, axis=1)                  # (B,)
    valid = jnp.arange(post_n)[None, :] < num_kept[:, None]  # (B, post_n)

    props_sel = jnp.transpose(
        jnp.take_along_axis(props_b4n, sel[:, None, :], axis=2), (0, 2, 1))   # (B, post_n, 4)
    scores_sel = jnp.take_along_axis(top_scores, sel, axis=1)

    batch_idx = jnp.arange(B, dtype=jnp.float32)[:, None]   # (B, 1)
    # rpn_scores[i, :, 0] = i, overwritten with scores for the first num_kept rows
    rpn_scores = jnp.where(valid, scores_sel, batch_idx)[..., None]           # (B, post_n, 1)
    # rpn_bbox[i, :, 0] = i for every row; cols 1:5 are boxes (zero past num_kept)
    bbox_coords = jnp.where(valid[..., None], props_sel, 0.0)
    rpn_bbox = jnp.concatenate(
        [jnp.broadcast_to(batch_idx[:, :, None], (B, post_n, 1)), bbox_coords],
        axis=-1)                                            # (B, post_n, 5)
    return rpn_scores, rpn_bbox, anchors
    # TODO(synk): top-k / argsort ordering has no clean Pallas equivalent at these
    # sizes; it stays in plain XLA.


# ----------------------------- demo -------------------------------------------
if __name__ == "__main__":
    key = jax.random.PRNGKey(0)
    B, A, H, W = 2, ANCHOR_BASES.shape[0], 8, 8
    k1, k2 = jax.random.split(key)
    scores = jax.random.normal(k1, (B, 2 * A, H, W), dtype=jnp.float32)
    bbox_deltas = 0.1 * jax.random.normal(k2, (B, 4 * A, H, W), dtype=jnp.float32)
    im_info = jnp.array([[H * STRIDE, W * STRIDE, 1.0]] * B, dtype=jnp.float32)

    rpn_scores, rpn_bbox, anchors = rpn_proposal_forward(
        scores, bbox_deltas, im_info, ANCHOR_BASES, STRIDE,
        PRE_NMS_TOP_N, POST_NMS_TOP_N, NMS_THRESH, MIN_SIZE, training=False)

    jax.block_until_ready((rpn_scores, rpn_bbox, anchors))
    assert rpn_scores.shape == (B, POST_NMS_TOP_N["TEST"], 1)
    assert rpn_bbox.shape == (B, POST_NMS_TOP_N["TEST"], 5)
    assert anchors.shape == (H * W * A, 4)
    print("KERNEL_OK")
</pallas_src>

<mosaic_0001>
module attributes {stable_mosaic.version = 11 : i64} {
  func.func @decode_clip_kernel(%arg0: memref<1x4x192xf32, #tpu.memory_space<vmem>>, %arg1: memref<2x4x192xf32, #tpu.memory_space<vmem>>, %arg2: memref<2x2x1xf32, #tpu.memory_space<vmem>>, %arg3: memref<2x4x192xf32, #tpu.memory_space<vmem>>) attributes {dimension_semantics = [], scalar_prefetch = 0 : i64, scratch_operands = 0 : i64, tpu.core_type = #tpu.core_type<tc>} {
    %c0 = arith.constant 0 : index
    %c0_0 = arith.constant 0 : index
    %c0_1 = arith.constant 0 : index
    %0 = vector.load %arg0[%c0, %c0_0, %c0_1] : memref<1x4x192xf32, #tpu.memory_space<vmem>>, vector<1x1x192xf32>
    %c0_2 = arith.constant 0 : index
    %c1 = arith.constant 1 : index
    %c0_3 = arith.constant 0 : index
    %1 = vector.load %arg0[%c0_2, %c1, %c0_3] : memref<1x4x192xf32, #tpu.memory_space<vmem>>, vector<1x1x192xf32>
    %c0_4 = arith.constant 0 : index
    %c2 = arith.constant 2 : index
    %c0_5 = arith.constant 0 : index
    %2 = vector.load %arg0[%c0_4, %c2, %c0_5] : memref<1x4x192xf32, #tpu.memory_space<vmem>>, vector<1x1x192xf32>
    %c0_6 = arith.constant 0 : index
    %c3 = arith.constant 3 : index
    %c0_7 = arith.constant 0 : index
    %3 = vector.load %arg0[%c0_6, %c3, %c0_7] : memref<1x4x192xf32, #tpu.memory_space<vmem>>, vector<1x1x192xf32>
    %c0_8 = arith.constant 0 : index
    %c0_9 = arith.constant 0 : index
    %c0_10 = arith.constant 0 : index
    %4 = vector.load %arg1[%c0_8, %c0_9, %c0_10] : memref<2x4x192xf32, #tpu.memory_space<vmem>>, vector<2x1x192xf32>
    %c0_11 = arith.constant 0 : index
    %c1_12 = arith.constant 1 : index
    %c0_13 = arith.constant 0 : index
    %5 = vector.load %arg1[%c0_11, %c1_12, %c0_13] : memref<2x4x192xf32, #tpu.memory_space<vmem>>, vector<2x1x192xf32>
    %c0_14 = arith.constant 0 : index
    %c2_15 = arith.constant 2 : index
    %c0_16 = arith.constant 0 : index
    %6 = vector.load %arg1[%c0_14, %c2_15, %c0_16] : memref<2x4x192xf32, #tpu.memory_space<vmem>>, vector<2x2x192xf32>
    %7 = math.exp %6 : vector<2x2x192xf32>
    %8 = vector.broadcast %0 : vector<1x1x192xf32> to vector<2x1x192xf32>
    %9 = arith.mulf %4, %8 : vector<2x1x192xf32>
    %10 = vector.broadcast %2 : vector<1x1x192xf32> to vector<2x1x192xf32>
    %11 = arith.addf %9, %10 : vector<2x1x192xf32>
    %12 = vector.broadcast %1 : vector<1x1x192xf32> to vector<2x1x192xf32>
    %13 = arith.mulf %5, %12 : vector<2x1x192xf32>
    %14 = vector.broadcast %3 : vector<1x1x192xf32> to vector<2x1x192xf32>
    %15 = arith.addf %13, %14 : vector<2x1x192xf32>
    %16 = vector.extract_strided_slice %7 {offsets = [0, 0, 0], sizes = [2, 1, 192], strides = [1, 1, 1]} : vector<2x2x192xf32> to vector<2x1x192xf32>
    %17 = vector.broadcast %0 : vector<1x1x192xf32> to vector<2x1x192xf32>
    %18 = arith.mulf %16, %17 : vector<2x1x192xf32>
    %cst = arith.constant 5.000000e-01 : f32
    %19 = vector.broadcast %cst : f32 to vector<2x1x192xf32>
    %20 = arith.mulf %19, %18 : vector<2x1x192xf32>
    %21 = vector.extract_strided_slice %7 {offsets = [0, 1, 0], sizes = [2, 1, 192], strides = [1, 1, 1]} : vector<2x2x192xf32> to vector<2x1x192xf32>
    %22 = vector.broadcast %1 : vector<1x1x192xf32> to vector<2x1x192xf32>
    %23 = arith.mulf %21, %22 : vector<2x1x192xf32>
    %cst_17 = arith.constant 5.000000e-01 : f32
    %24 = vector.broadcast %cst_17 : f32 to vector<2x1x192xf32>
    %25 = arith.mulf %24, %23 : vector<2x1x192xf32>
    %c0_18 = arith.constant 0 : index
    %c0_19 = arith.constant 0 : index
    %c0_20 = arith.constant 0 : index
    %26 = vector.load %arg2[%c0_18, %c0_19, %c0_20] : memref<2x2x1xf32, #tpu.memory_space<vmem>>, vector<2x1x1xf32>
    %c0_21 = arith.constant 0 : index
    %c1_22 = arith.constant 1 : index
    %c0_23 = arith.constant 0 : index
    %27 = vector.load %arg2[%c0_21, %c1_22, %c0_23] : memref<2x2x1xf32, #tpu.memory_space<vmem>>, vector<2x1x1xf32>
    %28 = arith.subf %11, %20 : vector<2x1x192xf32>
    %cst_24 = arith.constant 0.000000e+00 : f32
    %29 = vector.broadcast %cst_24 : f32 to vector<2x1x192xf32>
    %30 = arith.maximumf %29, %28 : vector<2x1x192xf32>
    %31 = vector.broadcast %26 : vector<2x1x1xf32> to vector<2x1x192xf32>
    %32 = arith.minimumf %31, %30 : vector<2x1x192xf32>
    %c0_25 = arith.constant 0 : index
    %c0_26 = arith.constant 0 : index
    %c0_27 = arith.constant 0 : index
    %33 = vector.load %arg3[%c0_25, %c0_26, %c0_27] : memref<2x4x192xf32, #tpu.memory_space<vmem>>, vector<2x1x192xf32>
    tpu.vector_store %arg3[%c0_25, %c0_26, %c0_27], %32 {strides = array<i32>} : memref<2x4x192xf32, #tpu.memory_space<vmem>>, vector<2x1x192xf32>,
    %34 = arith.subf %15, %25 : vector<2x1x192xf32>
    %cst_28 = arith.constant 0.000000e+00 : f32
    %35 = vector.broadcast %cst_28 : f32 to vector<2x1x192xf32>
    %36 = arith.maximumf %35, %34 : vector<2x1x192xf32>
    %37 = vector.broadcast %27 : vector<2x1x1xf32> to vector<2x1x192xf32>
    %38 = arith.minimumf %37, %36 : vector<2x1x192xf32>
    %c0_29 = arith.constant 0 : index
    %c1_30 = arith.constant 1 : index
    %c0_31 = arith.constant 0 : index
    %39 = vector.load %arg3[%c0_29, %c1_30, %c0_31] : memref<2x4x192xf32, #tpu.memory_space<vmem>>, vector<2x1x192xf32>
    tpu.vector_store %arg3[%c0_29, %c1_30, %c0_31], %38 {strides = array<i32>} : memref<2x4x192xf32, #tpu.memory_space<vmem>>, vector<2x1x192xf32>,
    %40 = arith.addf %11, %20 : vector<2x1x192xf32>
    %cst_32 = arith.constant 0.000000e+00 : f32
    %41 = vector.broadcast %cst_32 : f32 to vector<2x1x192xf32>
    %42 = arith.maximumf %41, %40 : vector<2x1x192xf32>
    %43 = vector.broadcast %26 : vector<2x1x1xf32> to vector<2x1x192xf32>
    %44 = arith.minimumf %43, %42 : vector<2x1x192xf32>
    %c0_33 = arith.constant 0 : index
    %c2_34 = arith.constant 2 : index
    %c0_35 = arith.constant 0 : index
    %45 = vector.load %arg3[%c0_33, %c2_34, %c0_35] : memref<2x4x192xf32, #tpu.memory_space<vmem>>, vector<2x1x192xf32>
    tpu.vector_store %arg3[%c0_33, %c2_34, %c0_35], %44 {strides = array<i32>} : memref<2x4x192xf32, #tpu.memory_space<vmem>>, vector<2x1x192xf32>,
    %46 = arith.addf %15, %25 : vector<2x1x192xf32>
    %cst_36 = arith.constant 0.000000e+00 : f32
    %47 = vector.broadcast %cst_36 : f32 to vector<2x1x192xf32>
    %48 = arith.maximumf %47, %46 : vector<2x1x192xf32>
    %49 = vector.broadcast %27 : vector<2x1x1xf32> to vector<2x1x192xf32>
    %50 = arith.minimumf %49, %48 : vector<2x1x192xf32>
    %c0_37 = arith.constant 0 : index
    %c3_38 = arith.constant 3 : index
    %c0_39 = arith.constant 0 : index
    %51 = vector.load %arg3[%c0_37, %c3_38, %c0_39] : memref<2x4x192xf32, #tpu.memory_space<vmem>>, vector<2x1x192xf32>
    tpu.vector_store %arg3[%c0_37, %c3_38, %c0_39], %50 {strides = array<i32>} : memref<2x4x192xf32, #tpu.memory_space<vmem>>, vector<2x1x192xf32>,
    return
  }
}

</mosaic_0001>

<bundles_post_ra>
// kernel: tpu_custom_call.1
= control target key start
LH: loop header
LB: loop body
LE: loop exit
PB: predicated region body
PF: predicated region fallthrough
CT: control target
= control target key end

     0   :  { %8 = vsyncpa [#allocation3], 0  ;;  %s713_s0 = inlined_call_operand.hbm [shape: f32[1,4,192], index: 0, kind: input, shape index: {}]   ;;  %s714_s1 = inlined_call_operand.hbm [shape: f32[2,4,192], index: 1, kind: input, shape index: {}]   ;;  %s715_s2 = inlined_call_operand.vmem [shape: f32[2,2,1], index: 2, kind: input, shape index: {}]   ;;  %s716_s3 = inlined_call_operand.hbm [shape: f32[2,4,192], index: 3, kind: output, shape index: {}]  }
   0x1   :  { %9 = vsyncpa [#allocation6], 0 }
   0x2   :  { %10 = vsyncpa [#allocation4], 0  ;;  %s576_s12 = smov [#allocation2]   ;;  %s577_s14 = smov [#allocation5]  }
   0x3   :  { %s17_s13 = sshll.u32 %s576_s12, 4  ;;  %s26_s15 = sshll.u32 %s577_s14, 4  ;;  %s18_s13 = int_to_ptr.vmem [resolvable:$true] %s17_s13  ;;  %s604_s15 = int_to_ptr.vmem [resolvable:$true] %s26_s15 }
   0x4   :  { %s504_s18 = scalar_lea.hbm %s713_s0, 128 }
   0x5   :  { %p505_p0 = scmp.ne.s32.totalorder %s713_s0, %s504_s18  ;;  %p508_p1 = scmp.lt.u32.totalorder %s504_s18, %s713_s0 }
   0x7   :  { %p510_p2 = pnand %p508_p1, %p505_p0 }
   0x9   :  { %513 = shalt.err (!%p510_p2)
}
   0xa   :  { %s514_s23 = scalar_lea.vmem %s18_s13, 128  ;;  %p519_p4 = scmp.lt.s32.totalorder %s18_s13, %s18_s13 }
   0xb   :  { %p515_p3 = scmp.ne.s32.totalorder %s18_s13, %s514_s23  ;;  %p520_p5 = scmp.lt.s32.totalorder %s514_s23, %s514_s23 }
   0xd   :  { %p521_p6 = por %p520_p5, %p519_p4 }
   0xf   :  { %p522_p7 = pnand %p521_p6, %p515_p3 }
  0x11   :  { %525 = shalt.err (!%p522_p7)
}
  0x12   :  { %20 = dma.hbm_to_vmem [thread:$0]  %s713_s0, 128, %s18_s13, [#allocation3]  }
  0x13   :  { %s526_s28 = scalar_lea.hbm %s714_s1, 256 }
  0x14   :  { %p527_p8 = scmp.ne.s32.totalorder %s714_s1, %s526_s28  ;;  %p530_p9 = scmp.lt.u32.totalorder %s526_s28, %s714_s1 }
  0x16   :  { %p532_p10 = pnand %p530_p9, %p527_p8 }
  0x18   :  { %535 = shalt.err (!%p532_p10)
}
  0x19   :  { %s536_s6 = scalar_lea.vmem %s604_s15, 256  ;;  %p541_p12 = scmp.lt.s32.totalorder %s604_s15, %s604_s15 }
  0x1a   :  { %p537_p11 = scmp.ne.s32.totalorder %s604_s15, %s536_s6  ;;  %p542_p13 = scmp.lt.s32.totalorder %s536_s6, %s536_s6 }
  0x1c   :  { %p543_p0 = por %p542_p13, %p541_p12 }
  0x1e   :  { %p544_p1 = pnand %p543_p0, %p537_p11 }
  0x20   :  { %547 = shalt.err (!%p544_p1)
}
  0x21   :  { %s578_s0 = smov 128   ;;  %s579_s7 = smov 8  }
  0x22   :  { %32 = dma.hbm_to_vmem [thread:$0]  %s714_s1, 256, %s604_s15, [#allocation6], %s578_s0, %s578_s0, %s579_s7  }
  0x23   :  { %570 = dma.done.wait [#allocation3], 128  }
  0x24   :  { %571 = vsyncadd [#allocation3], 4294967168 }
  0x25   :  { %572 = dma.done.wait [#allocation6], 256  }
  0x26   :  { %573 = vsyncadd [#allocation6], 4294967040  ;;  %v580_v0 = vmov 0   ;;  %v97_v1 = vld [vmem:[%s715_s2 + $0x1] sm:$0x1]  ;;  %v581_v8 = vmov 286326784   ;;  %v73_v10 = vlaneseq }
  0x27   :  { %499 = vset.pattern.permute.xlu1 %v580_v0  ;;  %498 = vset.pattern.permute.xlu0 %v580_v0  ;;  %v95_v2 = vld [vmem:[%s715_s2] sm:$0x1]  ;;  %v98_v3 = vld [vmem:[%s715_s2 + $0x3] sm:$0x1]  ;;  %v96_v4 = vld [vmem:[%s715_s2 + $0x2] sm:$0x1]  ;;  %v71_v9 = vunpack.c.l.s4 %v581_v8 }
  0x28   :  { %258 = vperm.xlu1 %499, %v97_v1   ;;  %139 = vperm.xlu0 %498, %v95_v2   ;;  %v55_v5 = vld [vmem:[#allocation5] sm:$0xcc]  ;;  %v56_v7 = vld [vmem:[#allocation5 + $0x8] sm:$0xcc]  ;;  %v74_v13 = vshrl.u32 %v73_v10, 7  ;;  %vm662_vm0 = vcmp.lt.s32.totalorder %v73_v10, 192 }
  0x29   :  { %v57_v6 = vmul.f32 1.442695, %v55_v5  ;;  %v59_v11 = vmul.f32 1.442695, %v56_v7  ;;  %v72_v12 = vunpack.c.0.s8 %v71_v9  ;;  %v582_v16 = vmov 1966171168  }
  0x2a   :  { %v43_v15 = vld [vmem:[#allocation2 + $0x1] ss:$4 sm:$0x3]  ;;  %v102_v17 = vunpack.c.l.s4 %v582_v16  ;;  %v41_v20 = vld [vmem:[#allocation2] ss:$4 sm:$0x3] }
  0x2b   :  { %500 = vpow2.f32 %v57_v6  ;;  %v75_v14 = vsub.s32 %v72_v12, %v74_v13  ;;  %v52_v35 = vld [vmem:[#allocation5 + $0x1] ss:$4 sm:$0x3]  ;;  %v48_v37 = vld [vmem:[#allocation5] ss:$4 sm:$0x3] }
  0x2c   :  { %263 = vperm.xlu1 %499, %v98_v3   ;;  %144 = vperm.xlu0 %498, %v96_v4   ;;  %502 = vpow2.f32 %v59_v11  ;;  %v103_v22 = vunpack.c.0.s8 %v102_v17  ;;  %v65_v40 = vmul.f32 %v52_v35, %v43_v15  ;;  %v54_v42 = vld [vmem:[#allocation5 + $0x9] ss:$4 sm:$0x3]  ;;  %v47_v43 = vld [vmem:[#allocation2 + $0x3] ss:$4 sm:$0x3]  ;;  %v61_v44 = vmul.f32 %v48_v37, %v41_v20 }
  0x2d   :  { %v89_v18 = vrot.slane %v43_v15, %v75_v14  ;;  %v76_v24 = vrot.slane %v41_v20, %v75_v14  ;;  %v45_v46 = vld [vmem:[#allocation2 + $0x2] ss:$4 sm:$0x3]  ;;  %v66_v48 = vmul.f32 %v54_v42, %v43_v15  ;;  %v50_v50 = vld [vmem:[#allocation5 + $0x8] ss:$4 sm:$0x3] }
  0x2e   :  { %v651_v26 = vsub.s32 %v103_v22, %v74_v13  ;;  %v67_v51 = vadd.f32 %v65_v40, %v47_v43  ;;  %v63_v53 = vadd.f32 %v61_v44, %v45_v46  ;;  %v62_v55 = vmul.f32 %v50_v50, %v41_v20  ;;  %s583_s2 = smov [#allocation7]  }
  0x2f   :  { %v68_v57 = vadd.f32 %v66_v48, %v47_v43  ;;  %v151_v3 = vsub.s32 0, %v74_v13  ;;  %v155_v4 = vsub.s32 1, %v74_v13  ;;  %s477_s17 = sshll.u32 %s583_s2, 4  ;;  %s478_s17 = int_to_ptr.vmem [resolvable:$true] %s477_s17 }
  0x30   :  { %v64_v63 = vadd.f32 %v62_v55, %v45_v46  ;;  %s548_s18 = scalar_lea.vmem %s478_s17, 256  ;;  %p553_p3 = scmp.lt.s32.totalorder %s478_s17, %s478_s17 }
  0x31   :  { %p549_p2 = scmp.ne.s32.totalorder %s478_s17, %s548_s18  ;;  %p554_p4 = scmp.lt.s32.totalorder %s548_s18, %s548_s18 }
  0x33   :  { %p555_p5 = por %p554_p4, %p553_p3 }
  0x35   :  { %v501_v19 = vpop.eup %500  ;;  %p556_p6 = pnand %p555_p5, %p549_p2 }
  0x36   :  { %v503_v21 = vpop.eup %502  ;;  %v91_v23 = vmul.f32 %v501_v19, %v89_v18  ;;  %v78_v28 = vmul.f32 %v501_v19, %v76_v24 }
  0x37   :  { %v92_v25 = vmul.f32 %v503_v21, %v89_v18  ;;  %v79_v32 = vmul.f32 %v503_v21, %v76_v24 }
  0x38   :  { %v93_v27 = vmul.f32 0.5, %v91_v23  ;;  %v80_v31 = vmul.f32 0.5, %v78_v28 }
  0x39   :  { %v94_v29 = vmul.f32 0.5, %v92_v25  ;;  %v81_v38 = vmul.f32 0.5, %v79_v32 }
  0x3a   :  { %v224_v30 = vrot.slane %v93_v27, %v651_v26  ;;  %v107_v36 = vrot.slane %v80_v31, %v651_v26 }
  0x3b   :  { %v240_v33 = vrot.slane %v94_v29, %v651_v26  ;;  %v122_v47 = vrot.slane %v81_v38, %v651_v26 }
  0x3c   :  { %v225_v34 = vcombine.high %v224_v30, %v224_v30  ;;  %v114_v45 = vrot.slane %v107_v36, %v651_v26 }
  0x3d   :  { %v241_v39 = vcombine.high %v240_v33, %v240_v33  ;;  %v129_v56 = vrot.slane %v122_v47, %v651_v26 }
  0x3e   :  { %v232_v41 = vrot.slane %v225_v34, %v651_v26  ;;  %v115_v54 = vcombine.high %v114_v45, %v114_v45 }
  0x3f   :  { %v248_v49 = vrot.slane %v241_v39, %v651_v26  ;;  %v130_v0 = vcombine.high %v129_v56, %v129_v56 }
  0x40   :  { %v233_v52 = vcombine.high %v232_v41, %v232_v41  ;;  %v133_v61 = vsub.f32 %v63_v53, %v115_v54  ;;  %v332_v62 = vadd.f32 %v115_v54, %v63_v53 }
  0x41   :  { %v249_v58 = vcombine.high %v248_v49, %v248_v49  ;;  %v134_v9 = vsub.f32 %v64_v63, %v130_v0  ;;  %v333_v11 = vadd.f32 %v130_v0, %v64_v63 }
  0x42   :  { %v252_v59 = vsub.f32 %v67_v51, %v233_v52  ;;  %v402_v60 = vadd.f32 %v233_v52, %v67_v51  ;;  %v135_v7 = vmax.f32 %v133_v61, 0.0  ;;  %v334_v8 = vmax.f32 %v332_v62, 0.0 }
  0x43   :  { %v253_v1 = vsub.f32 %v68_v57, %v249_v58  ;;  %v403_v2 = vadd.f32 %v249_v58, %v68_v57  ;;  %v136_v13 = vmax.f32 %v134_v9, 0.0  ;;  %v335_v24 = vmax.f32 %v333_v11, 0.0 }
  0x44   :  { %v254_v5 = vmax.f32 %v252_v59, 0.0  ;;  %v404_v6 = vmax.f32 %v402_v60, 0.0  ;;  %v152_v19 = vrot.slane %v135_v7, %v151_v3  ;;  %v156_v20 = vrot.slane %v135_v7, %v155_v4 }
  0x45   :  { %v255_v12 = vmax.f32 %v253_v1, 0.0  ;;  %v405_v14 = vmax.f32 %v403_v2, 0.0  ;;  %v341_v21 = vrot.slane %v334_v8, %v151_v3  ;;  %v345_v22 = vrot.slane %v334_v8, %v155_v4 }
  0x46   :  { %v271_v15 = vrot.slane %v254_v5, %v151_v3  ;;  %v275_v16 = vrot.slane %v254_v5, %v155_v4  ;;  %v411_v17 = vrot.slane %v404_v6, %v151_v3  ;;  %v415_v18 = vrot.slane %v404_v6, %v155_v4 }
  0x47   :  { %v279_v28 = vrot.slane %v255_v12, %v151_v3  ;;  %v283_v29 = vrot.slane %v255_v12, %v155_v4  ;;  %v419_v30 = vrot.slane %v405_v14, %v151_v3  ;;  %v423_v31 = vrot.slane %v405_v14, %v155_v4 }
  0x48   :  { %v160_v41 = vrot.slane %v136_v13, %v151_v3  ;;  %v164_v42 = vrot.slane %v136_v13, %v155_v4  ;;  %v349_v47 = vrot.slane %v335_v24, %v151_v3  ;;  %v353_v48 = vrot.slane %v335_v24, %v155_v4 }
  0xa7   :  { %v259_v25 = vpop.permute.xlu1 %258  ;;  %v140_v27 = vpop.permute.xlu0 %139 }
  0xa8   :  { %v288_v32 = vmin.f32 %v259_v25, %v271_v15  ;;  %v289_v33 = vmin.f32 %v259_v25, %v275_v16  ;;  %v428_v34 = vmin.f32 %v259_v25, %v411_v17  ;;  %v429_v35 = vmin.f32 %v259_v25, %v415_v18 }
  0xa9   :  { %v169_v36 = vmin.f32 %v140_v27, %v152_v19  ;;  %v170_v37 = vmin.f32 %v140_v27, %v156_v20  ;;  %v358_v38 = vmin.f32 %v140_v27, %v341_v21  ;;  %v359_v39 = vmin.f32 %v140_v27, %v345_v22 }
  0xaa   :  { %v296_v10 = vcombine.low %v288_v32, %v289_v33  ;;  %v436_v40 = vcombine.low %v428_v34, %v429_v35 }
  0xab   :  { %v177_v43 = vcombine.low %v169_v36, %v170_v37  ;;  %v366_v44 = vcombine.low %v358_v38, %v359_v39  ;;  %v264_v45 = vpop.permute.xlu1 %263  ;;  %v145_v46 = vpop.permute.xlu0 %144 }
  0xac   :  { %v303_v49 = vrot.slane %v296_v10, %v651_v26  ;;  %v443_v50 = vrot.slane %v436_v40, %v651_v26  ;;  %v290_v51 = vmin.f32 %v264_v45, %v279_v28  ;;  %v291_v52 = vmin.f32 %v264_v45, %v283_v29 }
  0xad   :  { %v184_v53 = vrot.slane %v177_v43, %v651_v26  ;;  %v373_v54 = vrot.slane %v366_v44, %v651_v26  ;;  %v430_v55 = vmin.f32 %v264_v45, %v419_v30  ;;  %v431_v56 = vmin.f32 %v264_v45, %v423_v31 }
  0xae   :  { %v310_v57 = vrot.slane %v303_v49, %v651_v26  ;;  %v450_v58 = vrot.slane %v443_v50, %v651_v26  ;;  %v311_v59 = vcombine.low %v290_v51, %v291_v52  ;;  %v171_v60 = vmin.f32 %v145_v46, %v160_v41 }
  0xaf   :  { %v191_v61 = vrot.slane %v184_v53, %v651_v26  ;;  %v380_v62 = vrot.slane %v373_v54, %v651_v26  ;;  %v451_v63 = vcombine.low %v430_v55, %v431_v56  ;;  %v172_v0 = vmin.f32 %v145_v46, %v164_v42 }
  0xb0   :  { %329 = vst.msk [vmem:[#allocation7 + $0x1] ss:$4 sm:$0x3] %vm662_vm0, %v310_v57  ;;  %469 = vst.msk [vmem:[#allocation7 + $0x3] ss:$4 sm:$0x3] %vm662_vm0, %v450_v58  ;;  %v318_v1 = vrot.slane %v311_v59, %v651_v26  ;;  %v360_v2 = vmin.f32 %v145_v46, %v349_v47  ;;  %v361_v3 = vmin.f32 %v145_v46, %v353_v48 }
  0xb1   :  { %213 = vst.msk [vmem:[#allocation7] ss:$4 sm:$0x3] %vm662_vm0, %v191_v61  ;;  %399 = vst.msk [vmem:[#allocation7 + $0x2] ss:$4 sm:$0x3] %vm662_vm0, %v380_v62  ;;  %v458_v4 = vrot.slane %v451_v63, %v651_v26  ;;  %v192_v5 = vcombine.low %v171_v60, %v172_v0 }
  0xb2   :  { %v325_v6 = vrot.slane %v318_v1, %v651_v26  ;;  %v381_v7 = vcombine.low %v360_v2, %v361_v3 }
  0xb3   :  { %v465_v8 = vrot.slane %v458_v4, %v651_v26  ;;  %v199_v9 = vrot.slane %v192_v5, %v651_v26 }
  0xb4   :  { %331 = vst.msk [vmem:[#allocation7 + $0x9] ss:$4 sm:$0x3] %vm662_vm0, %v325_v6  ;;  %v388_v11 = vrot.slane %v381_v7, %v651_v26 }
  0xb5   :  { %471 = vst.msk [vmem:[#allocation7 + $0xb] ss:$4 sm:$0x3] %vm662_vm0, %v465_v8  ;;  %v206_v12 = vrot.slane %v199_v9, %v651_v26 }
  0xb6   :  { %v395_v14 = vrot.slane %v388_v11, %v651_v26 }
  0xb7   :  { %215 = vst.msk [vmem:[#allocation7 + $0x8] ss:$4 sm:$0x3] %vm662_vm0, %v206_v12 }
  0xb8   :  { %401 = vst.msk [vmem:[#allocation7 + $0xa] ss:$4 sm:$0x3] %vm662_vm0, %v395_v14 }
  0xb9   :  { %559 = shalt.err (!%p556_p6)
}
  0xba   :  { %s560_s21 = scalar_lea.hbm %s716_s3, 256 }
  0xbb   :  { %p561_p7 = scmp.ne.s32.totalorder %s716_s3, %s560_s21  ;;  %p564_p8 = scmp.lt.u32.totalorder %s560_s21, %s716_s3 }
  0xbd   :  { %p566_p9 = pnand %p564_p8, %p561_p7 }
  0xbf   :  { %569 = shalt.err (!%p566_p9)
}
  0xc0   :  { %483 = dma.vmem_to_hbm [thread:$0]  %s478_s17, 256, %s716_s3, [#allocation4], %s578_s0, %s578_s0, %s579_s7  }
  0xc1   :  { %574 = dma.done.wait [#allocation4], 256  }
  0xc2   :  { %575 = vsyncadd [#allocation4], 4294967040 }
  0xc3   :  { %487 = vsyncpa [#allocation3], 1 }
  0xc4   :  { %488 = vsyncpa [#allocation6], 1 }
  0xc5   :  { %489 = vsyncpa [#allocation4], 1 }

</bundles_post_ra>
